<compile_context>
chip_gen: v6e
topology: v6e:2x2x1
jax: 0.10.0
libtpu: 0.0.40
codegen_flags: <defaults>
</compile_context>

<pallas_src>
import functools

import jax
import jax.numpy as jnp
from jax.experimental import pallas as pl
from jax.experimental.pallas import tpu as pltpu


# ----------------------------------------------------------------------------
# Kernels
# ----------------------------------------------------------------------------
def ffn_kernel_resident(x_ref, w1_ref, b1_ref, w2_ref, b2_ref, o_ref):
    # Weights are fully resident in VMEM (constant block index across the
    # 1-D row grid), so each grid step does the whole FFN for its row tile.
    h = jnp.dot(x_ref[...], w1_ref[...], preferred_element_type=jnp.float32)
    h = jnp.maximum(h + b1_ref[...], 0.0)
    out = jnp.dot(h.astype(w2_ref.dtype), w2_ref[...],
                  preferred_element_type=jnp.float32)
    o_ref[...] = (out + b2_ref[...]).astype(o_ref.dtype)


def ffn_kernel_tiled_scratch(x_ref, w1_ref, b1_ref, w2_ref, b2_ref, o_ref,
                             acc_ref):
    # Hidden dim tiled on grid axis 1 ("arbitrary"); f32 VMEM accumulator.
    hk = pl.program_id(1)

    @pl.when(hk == 0)
    def _():
        acc_ref[...] = jnp.zeros_like(acc_ref)

    h = jnp.dot(x_ref[...], w1_ref[...], preferred_element_type=jnp.float32)
    h = jnp.maximum(h + b1_ref[...], 0.0)
    acc_ref[...] += jnp.dot(h.astype(w2_ref.dtype), w2_ref[...],
                            preferred_element_type=jnp.float32)

    @pl.when(hk == pl.num_programs(1) - 1)
    def _():
        o_ref[...] = (acc_ref[...] + b2_ref[...]).astype(o_ref.dtype)


def ffn_kernel_tiled_accout(x_ref, w1_ref, b1_ref, w2_ref, b2_ref, o_ref):
    # Same as above but for float32 outputs: accumulate directly into o_ref
    # (output block is resident across the hidden axis), saving the tm*d_pad
    # f32 scratch + epilogue copy.
    hk = pl.program_id(1)

    @pl.when(hk == 0)
    def _():
        o_ref[...] = jnp.zeros_like(o_ref)

    h = jnp.dot(x_ref[...], w1_ref[...], preferred_element_type=jnp.float32)
    h = jnp.maximum(h + b1_ref[...], 0.0)
    o_ref[...] += jnp.dot(h.astype(w2_ref.dtype), w2_ref[...],
                          preferred_element_type=jnp.float32)

    @pl.when(hk == pl.num_programs(1) - 1)
    def _():
        o_ref[...] += b2_ref[...]


# ----------------------------------------------------------------------------
# Planning helpers (pure Python on static shapes)
# ----------------------------------------------------------------------------
def _round_up(a, b):
    return ((a + b - 1) // b) * b


def _vmem_capacity_bytes():
    cap = 64 << 20  # conservative fallback (v7x per-TC VMEM)
    try:
        info = pltpu.get_tpu_info()
        cap = int(getattr(info, "vmem_capacity_bytes", cap))
    except Exception:
        pass
    return cap


def _pick_tm(M, tm_max, want_two_tiles):
    """Row tile: power-of-two multiple of 16 (bf16 sublane packing), <= tm_max,
    with modest M-padding waste; optionally split so >=2 row tiles exist
    (dual-TensorCore v7x)."""
    m16 = _round_up(max(M, 1), 16)
    tm = 16
    for t in (1024, 512, 256, 128, 64, 32, 16):
        if t > tm_max:
            continue
        if _round_up(m16, t) - M <= max(M // 8, 15):
            tm = t
            break
    if want_two_tiles:
        while tm > 16 and _round_up(m16, tm) // tm < 2 and m16 >= 32:
            tm //= 2
    return tm


def _resident_vmem_bytes(tm, d_pad, h_pad, out_itemsize):
    bf16, f32 = 2, 4
    total = 0
    total += 2 * tm * d_pad * bf16            # x tiles (double buffered)
    total += 2 * tm * d_pad * out_itemsize    # out tiles
    total += 2 * d_pad * h_pad * bf16         # W1 (2 buffers allocated)
    total += 2 * h_pad * d_pad * bf16         # W2
    total += 2 * 8 * h_pad * f32              # b1 (padded to 8 sublanes)
    total += 2 * 8 * d_pad * f32              # b2
    total += tm * h_pad * (f32 + bf16)        # h intermediate (+ bf16 copy)
    total += tm * d_pad * f32                 # second-matmul f32 result
    return int(total * 1.25) + (2 << 20)


def _tiled_vmem_bytes(tm, th, d_pad, out_itemsize):
    bf16, f32 = 2, 4
    total = 0
    total += 2 * tm * d_pad * bf16            # x tiles
    total += 2 * tm * d_pad * out_itemsize    # out tiles
    total += 2 * d_pad * th * bf16            # W1 chunk tiles
    total += 2 * th * d_pad * bf16            # W2 chunk tiles
    total += 2 * 8 * th * f32                 # b1 chunk
    total += 2 * 8 * d_pad * f32              # b2
    total += tm * d_pad * f32                 # accumulator / f32 partial
    total += tm * th * (f32 + bf16)           # h intermediate
    return int(total * 1.3) + (2 << 20)


def _plan_tiles(M, d_pad, h_pad, out_itemsize):
    cap = _vmem_capacity_bytes()
    budget = int(cap * 0.85)                  # never ask for more than exists
    big_vmem = cap >= (96 << 20)              # v5e/v6e: 128 MiB; v7x: 64 MiB
    tm_max = 512 if big_vmem else 256         # keep v7x footprint modest
    tm = _pick_tm(M, tm_max, want_two_tiles=not big_vmem)

    # Path 1: weights fully resident in VMEM (read from HBM exactly once).
    res_bytes = _resident_vmem_bytes(tm, d_pad, h_pad, out_itemsize)
    if res_bytes <= budget:
        vmem = min(max(res_bytes, 16 << 20), budget)
        return dict(resident=True, tm=tm, th=h_pad,
                    m_pad=_round_up(M, tm), vmem=vmem)

    # Path 2: hidden dim tiled (grid axis 1) with accumulation.
    th_target = 2048 if big_vmem else 512
    th = 128
    for cand in (2048, 1024, 512, 256, 128):
        if (cand <= th_target and h_pad % cand == 0
                and _tiled_vmem_bytes(tm, cand, d_pad, out_itemsize) <= budget):
            th = cand
            break
    while _tiled_vmem_bytes(tm, th, d_pad, out_itemsize) > budget and tm > 16:
        tm //= 2
    vmem = min(max(_tiled_vmem_bytes(tm, th, d_pad, out_itemsize), 16 << 20),
               budget)
    return dict(resident=False, tm=tm, th=th,
                m_pad=_round_up(M, tm), vmem=vmem)


# ----------------------------------------------------------------------------
# Parameter preparation (run ONCE, outside the per-call forward)
# ----------------------------------------------------------------------------
def prepare_ffn_params(w1, b1, w2, b2, *, compute_dtype=jnp.bfloat16):
    """Pad + cast parameters once.  w1: (D, H), b1: (H,), w2: (H, D), b2: (D,)
    (already transposed vs. PyTorch's nn.Linear (out, in) layout)."""
    D, H = w1.shape
    d_pad = _round_up(D, 256 if D > 128 else 128)  # 256 = MXU granule (v6e/v7x)
    h_pad = _round_up(H, 256 if H > 128 else 128)
    w1_p = jnp.zeros((d_pad, h_pad), compute_dtype).at[:D, :H].set(
        w1.astype(compute_dtype))
    w2_p = jnp.zeros((h_pad, d_pad), compute_dtype).at[:H, :D].set(
        w2.astype(compute_dtype))
    b1_p = jnp.zeros((1, h_pad), jnp.float32).at[0, :H].set(
        b1.astype(jnp.float32))
    b2_p = jnp.zeros((1, d_pad), jnp.float32).at[0, :D].set(
        b2.astype(jnp.float32))
    return w1_p, b1_p, w2_p, b2_p


# ----------------------------------------------------------------------------
# Forward
# ----------------------------------------------------------------------------
@functools.partial(jax.jit, static_argnames=("compute_dtype",))
def feed_forward(x, w1_p, b1_p, w2_p, b2_p, *, compute_dtype=jnp.bfloat16):
    """x: (B, N, D); padded params from prepare_ffn_params()."""
    B, N, D = x.shape
    M = B * N
    d_pad, h_pad = w1_p.shape
    out_dtype = x.dtype
    out_itemsize = jnp.dtype(out_dtype).itemsize

    plan = _plan_tiles(M, d_pad, h_pad, out_itemsize)
    tm, th, m_pad, vmem = plan["tm"], plan["th"], plan["m_pad"], plan["vmem"]

    # Pad x only when needed (zero padding is exact for this FFN).
    x2d = x.reshape(M, D)
    if M == m_pad and D == d_pad:
        x2d = x2d.astype(compute_dtype)
    else:
        x2d = jnp.zeros((m_pad, d_pad), compute_dtype).at[:M, :D].set(
            x2d.astype(compute_dtype))

    n_row_tiles = m_pad // tm
    weight_reads = 1 if plan["resident"] else n_row_tiles
    wbytes = (w1_p.size * w1_p.dtype.itemsize + w2_p.size * w2_p.dtype.itemsize)
    cost = pl.CostEstimate(
        flops=int(4 * m_pad * d_pad * h_pad),
        transcendentals=0,
        bytes_accessed=int(m_pad * d_pad * 2 + weight_reads * wbytes
                           + b1_p.size * 4 + b2_p.size * 4
                           + m_pad * d_pad * out_itemsize),
    )

    if plan["resident"]:
        out2d = pl.pallas_call(
            ffn_kernel_resident,
            out_shape=jax.ShapeDtypeStruct((m_pad, d_pad), out_dtype),
            grid_spec=pltpu.PrefetchScalarGridSpec(
                num_scalar_prefetch=0,
                grid=(n_row_tiles,),
                in_specs=[
                    pl.BlockSpec((tm, d_pad), lambda i: (i, 0)),      # x rows
                    pl.BlockSpec((d_pad, h_pad), lambda i: (0, 0)),   # W1 full
                    pl.BlockSpec((1, h_pad), lambda i: (0, 0)),       # b1
                    pl.BlockSpec((h_pad, d_pad), lambda i: (0, 0)),   # W2 full
                    pl.BlockSpec((1, d_pad), lambda i: (0, 0)),       # b2
                ],
                out_specs=pl.BlockSpec((tm, d_pad), lambda i: (i, 0)),
            ),
            compiler_params=pltpu.CompilerParams(
                dimension_semantics=("parallel",),
                vmem_limit_bytes=vmem),
            cost_estimate=cost,
        )(x2d, w1_p, b1_p, w2_p, b2_p)
    else:
        if out_dtype == jnp.float32:
            kernel, scratch = ffn_kernel_tiled_accout, []
        else:
            kernel = ffn_kernel_tiled_scratch
            scratch = [pltpu.VMEM((tm, d_pad), jnp.float32)]
        out2d = pl.pallas_call(
            kernel,
            out_shape=jax.ShapeDtypeStruct((m_pad, d_pad), out_dtype),
            grid_spec=pltpu.PrefetchScalarGridSpec(
                num_scalar_prefetch=0,
                grid=(n_row_tiles, h_pad // th),
                in_specs=[
                    pl.BlockSpec((tm, d_pad), lambda i, k: (i, 0)),   # x rows
                    pl.BlockSpec((d_pad, th), lambda i, k: (0, k)),   # W1 chunk
                    pl.BlockSpec((1, th), lambda i, k: (0, k)),       # b1 chunk
                    pl.BlockSpec((th, d_pad), lambda i, k: (k, 0)),   # W2 chunk
                    pl.BlockSpec((1, d_pad), lambda i, k: (0, 0)),    # b2
                ],
                out_specs=pl.BlockSpec((tm, d_pad), lambda i, k: (i, 0)),
                scratch_shapes=scratch,
            ),
            compiler_params=pltpu.CompilerParams(
                dimension_semantics=("parallel", "arbitrary"),
                vmem_limit_bytes=vmem),
            cost_estimate=cost,
        )(x2d, w1_p, b1_p, w2_p, b2_p)

    return out2d[:M, :D].reshape(B, N, D)


if __name__ == "__main__":
    # Small shapes consistent with the module: (B, N, D) with dim=32, hid=64.
    B, N, D, H = 2, 8, 32, 64

    key = jax.random.PRNGKey(0)
    kx, kw1, kb1, kw2, kb2 = jax.random.split(key, 5)

    x = jax.random.normal(kx, (B, N, D), dtype=jnp.float32)

    # Deterministic parameter init (roughly matches nn.Linear's uniform scale).
    lim1 = 1.0 / (D ** 0.5)
    lim2 = 1.0 / (H ** 0.5)
    w1 = jax.random.uniform(kw1, (D, H), jnp.float32, -lim1, lim1)  # (in, out)
    b1 = jax.random.uniform(kb1, (H,), jnp.float32, -lim1, lim1)
    w2 = jax.random.uniform(kw2, (H, D), jnp.float32, -lim2, lim2)  # (in, out)
    b2 = jax.random.uniform(kb2, (D,), jnp.float32, -lim2, lim2)

    # Pad/cast weights once (outside the per-call forward).
    params = prepare_ffn_params(w1, b1, w2, b2)

    out = feed_forward(x, *params)
    out = jax.block_until_ready(out)

    # Reference check in plain JAX (same math as the PyTorch module).
    # bf16 MXU inputs/intermediate -> relaxed tolerance vs the f32 reference.
    ref = jnp.maximum(x @ w1 + b1, 0.0) @ w2 + b2
    assert out.shape == (B, N, D)
    assert jnp.allclose(out, ref, atol=2e-2, rtol=2e-2), (
        float(jnp.max(jnp.abs(out - ref))))

    # Extra sanity check with an M that is not a multiple of 16 (padding path).
    x2 = jax.random.normal(kx, (1, 7, D), dtype=jnp.float32)
    out2 = jax.block_until_ready(feed_forward(x2, *params))
    ref2 = jnp.maximum(x2 @ w1 + b1, 0.0) @ w2 + b2
    assert jnp.allclose(out2, ref2, atol=2e-2, rtol=2e-2), (
        float(jnp.max(jnp.abs(out2 - ref2))))

    print("KERNEL_OK")
</pallas_src>

<mosaic_0001>
module attributes {stable_mosaic.version = 11 : i64} {
  func.func @ffn_kernel_resident(%arg0: i32, %arg1: memref<16x128xbf16, #tpu.memory_space<vmem>>, %arg2: memref<128x128xbf16, #tpu.memory_space<vmem>>, %arg3: memref<1x128xf32, #tpu.memory_space<vmem>>, %arg4: memref<128x128xbf16, #tpu.memory_space<vmem>>, %arg5: memref<1x128xf32, #tpu.memory_space<vmem>>, %arg6: memref<16x128xf32, #tpu.memory_space<vmem>>) attributes {dimension_semantics = [#tpu.dimension_semantics<parallel>], iteration_bounds = array<i64: 1>, scalar_prefetch = 0 : i64, scratch_operands = 0 : i64, tpu.core_type = #tpu.core_type<tc>, window_params = [{transform_indices = @transform_0, window_bounds = array<i64: 16, 128>}, {pipeline_mode = #tpu.pipeline_mode<synchronous>, transform_indices = @transform_1, window_bounds = array<i64: 128, 128>}, {pipeline_mode = #tpu.pipeline_mode<synchronous>, transform_indices = @transform_2, window_bounds = array<i64: 1, 128>}, {pipeline_mode = #tpu.pipeline_mode<synchronous>, transform_indices = @transform_3, window_bounds = array<i64: 128, 128>}, {pipeline_mode = #tpu.pipeline_mode<synchronous>, transform_indices = @transform_4, window_bounds = array<i64: 1, 128>}, {transform_indices = @transform_5, window_bounds = array<i64: 16, 128>}]} {
    %c0 = arith.constant 0 : index
    %c0_0 = arith.constant 0 : index
    %0 = vector.load %arg1[%c0, %c0_0] : memref<16x128xbf16, #tpu.memory_space<vmem>>, vector<16x128xbf16>
    %c0_1 = arith.constant 0 : index
    %c0_2 = arith.constant 0 : index
    %1 = vector.load %arg2[%c0_1, %c0_2] : memref<128x128xbf16, #tpu.memory_space<vmem>>, vector<128x128xbf16>
    %cst = arith.constant dense<0.000000e+00> : vector<16x128xf32>
    %2 = tpu.matmul %0, %1, %cst {dimension_numbers = #tpu.dot_dimension_numbers<[1], [0], [0], [1], [0, 0, 1, 1], [], []>} : vector<16x128xbf16>, vector<128x128xbf16>, vector<16x128xf32> -> vector<16x128xf32>
    %c0_3 = arith.constant 0 : index
    %c0_4 = arith.constant 0 : index
    %3 = vector.load %arg3[%c0_3, %c0_4] : memref<1x128xf32, #tpu.memory_space<vmem>>, vector<1x128xf32>
    %4 = vector.broadcast %3 : vector<1x128xf32> to vector<16x128xf32>
    %5 = arith.addf %2, %4 : vector<16x128xf32>
    %cst_5 = arith.constant 0.000000e+00 : f32
    %6 = vector.broadcast %cst_5 : f32 to vector<16x128xf32>
    %7 = arith.maximumf %5, %6 : vector<16x128xf32>
    %8 = arith.truncf %7 : vector<16x128xf32> to vector<16x128xbf16>
    %c0_6 = arith.constant 0 : index
    %c0_7 = arith.constant 0 : index
    %9 = vector.load %arg4[%c0_6, %c0_7] : memref<128x128xbf16, #tpu.memory_space<vmem>>, vector<128x128xbf16>
    %cst_8 = arith.constant dense<0.000000e+00> : vector<16x128xf32>
    %10 = tpu.matmul %8, %9, %cst_8 {dimension_numbers = #tpu.dot_dimension_numbers<[1], [0], [0], [1], [0, 0, 1, 1], [], []>} : vector<16x128xbf16>, vector<128x128xbf16>, vector<16x128xf32> -> vector<16x128xf32>
    %c0_9 = arith.constant 0 : index
    %c0_10 = arith.constant 0 : index
    %11 = vector.load %arg5[%c0_9, %c0_10] : memref<1x128xf32, #tpu.memory_space<vmem>>, vector<1x128xf32>
    %12 = vector.broadcast %11 : vector<1x128xf32> to vector<16x128xf32>
    %13 = arith.addf %10, %12 : vector<16x128xf32>
    %c0_11 = arith.constant 0 : index
    %c0_12 = arith.constant 0 : index
    %14 = vector.load %arg6[%c0_11, %c0_12] : memref<16x128xf32, #tpu.memory_space<vmem>>, vector<16x128xf32>
    tpu.vector_store %arg6[%c0_11, %c0_12], %13 {strides = array<i32>} : memref<16x128xf32, #tpu.memory_space<vmem>>, vector<16x128xf32>,
    return
  }
  func.func @transform_0(%arg0: i32) -> (i32, i32) {
    %c0_i32 = arith.constant 0 : i32
    %c0_i32_0 = arith.constant 0 : i32
    return %arg0, %c0_i32 : i32, i32
  }
  func.func @transform_1(%arg0: i32) -> (i32, i32) {
    %c0_i32 = arith.constant 0 : i32
    %c0_i32_0 = arith.constant 0 : i32
    %c0_i32_1 = arith.constant 0 : i32
    return %c0_i32, %c0_i32_0 : i32, i32
  }
  func.func @transform_2(%arg0: i32) -> (i32, i32) {
    %c0_i32 = arith.constant 0 : i32
    %c0_i32_0 = arith.constant 0 : i32
    %c0_i32_1 = arith.constant 0 : i32
    return %c0_i32, %c0_i32_0 : i32, i32
  }
  func.func @transform_3(%arg0: i32) -> (i32, i32) {
    %c0_i32 = arith.constant 0 : i32
    %c0_i32_0 = arith.constant 0 : i32
    %c0_i32_1 = arith.constant 0 : i32
    return %c0_i32, %c0_i32_0 : i32, i32
  }
  func.func @transform_4(%arg0: i32) -> (i32, i32) {
    %c0_i32 = arith.constant 0 : i32
    %c0_i32_0 = arith.constant 0 : i32
    %c0_i32_1 = arith.constant 0 : i32
    return %c0_i32, %c0_i32_0 : i32, i32
  }
  func.func @transform_5(%arg0: i32) -> (i32, i32) {
    %c0_i32 = arith.constant 0 : i32
    %c0_i32_0 = arith.constant 0 : i32
    return %arg0, %c0_i32 : i32, i32
  }
}

</mosaic_0001>

<bundles_post_ra>
// kernel: feed_forward.1
= control target key start
LH: loop header
LB: loop body
LE: loop exit
PB: predicated region body
PF: predicated region fallthrough
CT: control target
= control target key end

     0   :  { %10 = vsyncpa [#allocation3], 0  ;;  %s493_s0 = inlined_call_operand.vmem [shape: bf16[16,128], index: 0, kind: input, shape index: {}]   ;;  %s494_s1 = inlined_call_operand.hbm [shape: bf16[128,128], index: 1, kind: input, shape index: {}]   ;;  %s495_s2 = inlined_call_operand.vmem [shape: f32[1,128], index: 2, kind: input, shape index: {}]   ;;  %s496_s3 = inlined_call_operand.hbm [shape: bf16[128,128], index: 3, kind: input, shape index: {}]   ;;  %s497_s4 = inlined_call_operand.vmem [shape: f32[1,128], index: 4, kind: input, shape index: {}]   ;;  %s498_s5 = inlined_call_operand.vmem [shape: f32[16,128], index: 5, kind: output, shape index: {}]  }
   0x1   :  { %11 = vsyncpa [#allocation5], 0  ;;  %s436_s18 = smov [#allocation2]  }
   0x2   :  { %s19_s19 = sshll.u32 %s436_s18, 4  ;;  %s20_s19 = int_to_ptr.vmem [resolvable:$true] %s19_s19 }
   0x3   :  { %s400_s20 = scalar_lea.vmem %s20_s19, 1024  ;;  %p405_p1 = scmp.lt.s32.totalorder %s20_s19, %s20_s19 }
   0x4   :  { %p401_p0 = scmp.ne.s32.totalorder %s20_s19, %s400_s20  ;;  %p406_p2 = scmp.lt.s32.totalorder %s400_s20, %s400_s20 }
   0x6   :  { %p407_p3 = por %p406_p2, %p405_p1 }
   0x8   :  { %p408_p4 = pnand %p407_p3, %p401_p0 }
   0xa   :  { %411 = shalt.err (!%p408_p4)
}
   0xb   :  { %s437_s21 = smov 64   ;;  %s438_s22 = smov 4  }
   0xc   :  { %25 = dma.hbm_to_vmem [thread:$0]  %s494_s1, 1024, %s20_s19, [#allocation3], %s437_s21, %s437_s21, %s438_s22  }
   0xd   :  { %s439_s25 = smov [#allocation4]  }
   0xe   :  { %s33_s26 = sshll.u32 %s439_s25, 4  ;;  %s34_s26 = int_to_ptr.vmem [resolvable:$true] %s33_s26 }
   0xf   :  { %s420_s27 = scalar_lea.vmem %s34_s26, 1024  ;;  %p425_p6 = scmp.lt.s32.totalorder %s34_s26, %s34_s26 }
  0x10   :  { %p421_p5 = scmp.ne.s32.totalorder %s34_s26, %s420_s27  ;;  %p426_p7 = scmp.lt.s32.totalorder %s420_s27, %s420_s27 }
  0x12   :  { %p427_p8 = por %p426_p7, %p425_p6 }
  0x14   :  { %p428_p9 = pnand %p427_p8, %p421_p5 }
  0x16   :  { %431 = shalt.err (!%p428_p9)
}
  0x17   :  { %39 = dma.hbm_to_vmem [thread:$0]  %s496_s3, 1024, %s34_s26, [#allocation5], %s437_s21, %s437_s21, %s438_s22  }
  0x18   :  { %432 = dma.done.wait [#allocation3], 1024  }
  0x19   :  { %433 = vsyncadd [#allocation3], 4294966272 }
  0x1a   :  { %434 = dma.done.wait [#allocation5], 1024  }
  0x1b   :  { %435 = vsyncadd [#allocation5], 4294966272  ;;  %v440_v0 = vmov 0.0   ;;  %vm441_vm0 = vmmov 0   ;;  %v375_v1 = vld [vmem:[#allocation2 + $0x38] sm:$0xff]   ;;  %v376_v2 = vld [vmem:[#allocation2 + $0x30] sm:$0xff]  }
  0x1c   :  { %329 = vmatprep.subr.bf16.mxu0 %v440_v0  ;;  %345 = vmatprep.mubr.msk.bf16.mxu0 %vm441_vm0, %v440_v0  ;;  %v377_v3 = vld [vmem:[#allocation2 + $0x28] sm:$0xff]   ;;  %v384_v4 = vld [vmem:[#allocation4 + $0x38] sm:$0xff]   ;;  %v378_v5 = vld [vmem:[#allocation2 + $0x20] sm:$0xff]  }
  0x1d   :  { %349 = vmatprep.subr.bf16.mxu1 %v440_v0  ;;  %365 = vmatprep.mubr.msk.bf16.mxu1 %vm441_vm0, %v440_v0  ;;  %v385_v6 = vld [vmem:[#allocation4 + $0x30] sm:$0xff]   ;;  %v379_v7 = vld [vmem:[#allocation2 + $0x18] sm:$0xff]   ;;  %v386_v8 = vld [vmem:[#allocation4 + $0x28] sm:$0xff]  }
  0x1e   :  { %330 = vmatpush3.bf16.msra.mxu0 %v375_v1  ;;  %350 = vmatpush3.bf16.msra.mxu1 %v384_v4  ;;  %v380_v9 = vld [vmem:[#allocation2 + $0x10] sm:$0xff]   ;;  %v387_v10 = vld [vmem:[#allocation4 + $0x20] sm:$0xff]   ;;  %v381_v11 = vld [vmem:[#allocation2 + $0x8] sm:$0xff]  }
  0x1f   :  { %331 = vmatprep.subr.bf16.mxu0 %v440_v0  ;;  %351 = vmatprep.subr.bf16.mxu1 %v440_v0  ;;  %v388_v12 = vld [vmem:[#allocation4 + $0x18] sm:$0xff]   ;;  %v382_v13 = vld [vmem:[#allocation2] sm:$0xff]   ;;  %v389_v15 = vld [vmem:[#allocation4 + $0x10] sm:$0xff]  }
  0x20   :  { %v383_v14 = vld [vmem:[%s493_s0] sm:$0xff]   ;;  %v390_v16 = vld [vmem:[#allocation4 + $0x8] sm:$0xff]  }
  0x21   :  { %v391_v17 = vld [vmem:[#allocation4] sm:$0xff]  }
  0x22   :  { %332 = vmatpush3.bf16.msra.mxu0 %v376_v2  ;;  %352 = vmatpush3.bf16.msra.mxu1 %v385_v6  ;;  %v292_v18 = vld [vmem:[%s495_s2] ss:$0 sm:$0xff] }
  0x23   :  { %333 = vmatprep.subr.bf16.mxu0 %v440_v0  ;;  %353 = vmatprep.subr.bf16.mxu1 %v440_v0  ;;  %v302_v28 = vld [vmem:[%s497_s4] ss:$0 sm:$0xff] }
  0x26   :  { %334 = vmatpush3.bf16.msra.mxu0 %v377_v3  ;;  %354 = vmatpush3.bf16.msra.mxu1 %v386_v8 }
  0x27   :  { %335 = vmatprep.subr.bf16.mxu0 %v440_v0  ;;  %355 = vmatprep.subr.bf16.mxu1 %v440_v0 }
  0x2a   :  { %336 = vmatpush3.bf16.msra.mxu0 %v378_v5  ;;  %356 = vmatpush3.bf16.msra.mxu1 %v387_v10 }
  0x2b   :  { %337 = vmatprep.subr.bf16.mxu0 %v440_v0  ;;  %357 = vmatprep.subr.bf16.mxu1 %v440_v0 }
  0x2e   :  { %338 = vmatpush3.bf16.msra.mxu0 %v379_v7  ;;  %358 = vmatpush3.bf16.msra.mxu1 %v388_v12 }
  0x2f   :  { %339 = vmatprep.subr.bf16.mxu0 %v440_v0  ;;  %359 = vmatprep.subr.bf16.mxu1 %v440_v0 }
  0x32   :  { %340 = vmatpush3.bf16.msra.mxu0 %v380_v9  ;;  %360 = vmatpush3.bf16.msra.mxu1 %v389_v15 }
  0x33   :  { %341 = vmatprep.subr.bf16.mxu0 %v440_v0  ;;  %361 = vmatprep.subr.bf16.mxu1 %v440_v0 }
  0x36   :  { %342 = vmatpush3.bf16.msra.mxu0 %v381_v11  ;;  %362 = vmatpush3.bf16.msra.mxu1 %v390_v16 }
  0x37   :  { %343 = vmatprep.subr.bf16.mxu0 %v440_v0  ;;  %363 = vmatprep.subr.bf16.mxu1 %v440_v0 }
  0x3a   :  { %344 = vmatpush3.bf16.msra.mxu0 %v382_v13  ;;  %364 = vmatpush3.bf16.msra.mxu1 %v391_v17 }
  0x3d   :  { %346 = vmatmul.mubr.bf16.vlgmr.msra.gmra.mxu0 %v383_v14 }
  0xfd   :  { %v162_v19 = vpop.f32.mrf.mxu0 }
  0xfe   :  { %v163_v21 = vadd.f32 %v292_v18, %v162_v19 }
  0xff   :  { %v347_v20 = vpop.f32.mrf.mxu0 }
 0x100   :  { %v169_v25 = vmax.f32 %v163_v21, 0.0 }
 0x101   :  { %v165_v22 = vpop.f32.mrf.mxu0 }
 0x102   :  { %v166_v23 = vadd.f32 %v292_v18, %v165_v22 }
 0x103   :  { %v348_v24 = vpop.f32.mrf.mxu0 }
 0x104   :  { %v170_v26 = vmax.f32 %v166_v23, 0.0 }
 0x106   :  { %v171_v27 = vpack.c.bf16 %v170_v26, %v169_v25 }
 0x108   :  { %366 = vmatmul.mubr.bf16.vlgmr.msra.gmra.mxu1 %v171_v27 }
 0x1c8   :  { %v277_v29 = vpop.f32.mrf.mxu1 }
 0x1c9   :  { %v278_v30 = vadd.f32 %v302_v28, %v277_v29 }
 0x1ca   :  { %v367_v31 = vpop.f32.mrf.mxu1 }
 0x1cb   :  { %284 = vst [vmem:[%s498_s5] sm:$0xff] %v278_v30 }
 0x1cc   :  { %v280_v32 = vpop.f32.mrf.mxu1 }
 0x1cd   :  { %v281_v33 = vadd.f32 %v302_v28, %v280_v32 }
 0x1ce   :  { %v368_v34 = vpop.f32.mrf.mxu1 }
 0x1cf   :  { %285 = vst [vmem:[%s498_s5 + $0x8] sm:$0xff] %v281_v33 }
 0x1d0   :  { %290 = vsyncpa [#allocation3], 1 }
 0x1d1   :  { %291 = vsyncpa [#allocation5], 1 }

</bundles_post_ra>
